<compile_context>
chip_gen: v7x
topology: tpu7x:2x2x1
jax: 0.10.0
libtpu: 0.0.40
codegen_flags: <defaults>
</compile_context>

<pallas_src>
import jax
import jax.numpy as jnp
from jax import lax
from jax.experimental import pallas as pl
from jax.experimental.pallas import tpu as pltpu


# Feature sizes of the PyTorch module.
F_IN, H1, H2, H3 = 8, 6, 4, 1

# All weights/biases packed into ONE pre-padded (8, 128) f32 slab, DMA'd once
# and resident across the whole batch grid (index_map -> (0, 0)).
#
# Slab layout (PyTorch [out, in] weight layout):
#   rows 0:6, cols 0:8   W1  [6, 8]
#   rows 0:6, col  8     b1  [6]        row 6, col 8 = 1.0  (ones-row generator)
#   rows 0:4, cols 9:15  W2  [4, 6]
#   rows 0:4, col  15    b2  [4]        row 4, col 15 = 1.0 (ones-row passthrough)
#   row  0,   cols 16:20 W3  [1, 4]
#   row  0,   col  20    b3  [1]
SLAB_SHAPE = (8, 128)


def mlp_kernel(p_ref, x_ref, o_ref):
    x = x_ref[...]                       # [tile_b, 8]  (batch-major, straight from HBM)

    w1 = p_ref[0:7, 0:8]                 # [7, 8]  rows 0:6 = W1, row 6 = 0
    b1 = p_ref[0:7, 8:9]                 # [7, 1]  rows 0:6 = b1, row 6 = 1  -> ones row
    w2 = p_ref[0:5, 9:16]                # [5, 7]  rows 0:4 = [W2 | b2], row 4 = e7
    w3 = p_ref[0:1, 16:21]               # [1, 5]  [W3 | b3]

    # Layer 1: relu(W1 @ x.T + b1) computed as a transposed-RHS contraction
    # (contract feature axis of both operands) -> [7, tile_b], batch on lanes.
    # Row 6 becomes relu(0 + 1) = 1: the constant "ones feature" for layers 2/3.
    h1 = lax.dot_general(w1, x, (((1,), (1,)), ((), ())),
                         preferred_element_type=jnp.float32)
    h1 = jnp.maximum(h1 + b1, 0.0)       # single [7,1] lane-broadcast per step

    # Layer 2: bias folded into the matmul via the ones row -> [5, tile_b];
    # its own row 4 regenerates the ones row for layer 3.
    h2 = jnp.maximum(jnp.dot(w2, h1, preferred_element_type=jnp.float32), 0.0)

    # Layer 3 + exact sigmoid (single EUP transcendental) -> lane-dense [1, tile_b].
    z = jnp.dot(w3, h2, preferred_element_type=jnp.float32)
    o_ref[...] = 0.5 * jnp.tanh(0.5 * z) + 0.5


def pack_params(w1, b1, w2, b2, w3, b3):
    """Pack all weights/biases (PyTorch [out, in] layout) into one (8,128) slab."""
    slab = jnp.zeros(SLAB_SHAPE, jnp.float32)
    slab = slab.at[0:6, 0:8].set(w1)
    slab = slab.at[0:6, 8].set(b1)
    slab = slab.at[6, 8].set(1.0)                 # layer-1 "bias" that emits the ones row
    slab = slab.at[0:4, 9:15].set(w2)
    slab = slab.at[0:4, 15].set(b2)
    slab = slab.at[4, 15].set(1.0)                # passthrough: keeps ones row for layer 3
    slab = slab.at[0, 16:20].set(w3[0])
    slab = slab.at[0, 20].set(b3[0])
    return slab


def mlp_forward(x, params, *, tile_b=2048):
    """x: [B, 8] float32 (PyTorch layout). Returns [B, 1]."""
    B = x.shape[0]
    # Tile must be a multiple of the 128-lane width; small batches -> one block.
    tile_b = max(128, pl.cdiv(tile_b, 128) * 128)
    tb = min(tile_b, pl.cdiv(B, 128) * 128)
    b_pad = pl.cdiv(B, tb) * tb
    if b_pad != B:
        # Only when B is ragged w.r.t. the tile; padded rows are sliced off below.
        x = jnp.pad(x, ((0, b_pad - B), (0, 0)))
    grid = (b_pad // tb,)

    out = pl.pallas_call(
        mlp_kernel,
        out_shape=jax.ShapeDtypeStruct((1, b_pad), jnp.float32),
        grid_spec=pltpu.PrefetchScalarGridSpec(
            num_scalar_prefetch=0,
            grid=grid,
            in_specs=[
                # Packed params: one block, resident across all grid steps.
                pl.BlockSpec(SLAB_SHAPE, lambda i: (0, 0)),
                # Input tile: contiguous [tb, 8] rows of x, slides along batch.
                pl.BlockSpec((tb, F_IN), lambda i: (i, 0)),
            ],
            # Lane-dense output tile: unmasked stores, batch on lanes.
            out_specs=pl.BlockSpec((1, tb), lambda i: (0, i)),
        ),
        compiler_params=pltpu.CompilerParams(
            dimension_semantics=("parallel",)),
    )(params, x)

    return out[0, :B].reshape(B, 1)


def init_linear_params(key, in_features, out_features):
    """Deterministic PyTorch-style init: U(-1/sqrt(in), 1/sqrt(in)), layout [out, in]."""
    kw, kb = jax.random.split(key)
    bound = 1.0 / jnp.sqrt(float(in_features))
    w = jax.random.uniform(kw, (out_features, in_features), jnp.float32,
                           minval=-bound, maxval=bound)
    b = jax.random.uniform(kb, (out_features,), jnp.float32,
                           minval=-bound, maxval=bound)
    return w, b


if __name__ == "__main__":
    key = jax.random.PRNGKey(0)
    k_x, k1, k2, k3 = jax.random.split(key, 4)

    B = 256
    x = jax.random.normal(k_x, (B, F_IN), jnp.float32)

    w1, b1 = init_linear_params(k1, F_IN, H1)
    w2, b2 = init_linear_params(k2, H1, H2)
    w3, b3 = init_linear_params(k3, H2, H3)
    params = pack_params(w1, b1, w2, b2, w3, b3)

    def ref_fn(xv):
        h = jnp.maximum(xv @ w1.T + b1, 0.0)
        h = jnp.maximum(h @ w2.T + b2, 0.0)
        return jax.nn.sigmoid(h @ w3.T + b3)

    # Small batch: single lane-dense block, grid=(1,).
    out = jax.block_until_ready(mlp_forward(x, params))
    assert out.shape == (B, 1)
    assert jnp.allclose(out, ref_fn(x), atol=1e-4), "mismatch vs reference (single block)"

    # Ragged batch with multiple grid steps (exercises tiling + padding path).
    B2 = 300
    x2 = jax.random.normal(jax.random.PRNGKey(1), (B2, F_IN), jnp.float32)
    out2 = jax.block_until_ready(mlp_forward(x2, params, tile_b=128))
    assert out2.shape == (B2, 1)
    assert jnp.allclose(out2, ref_fn(x2), atol=1e-4), "mismatch vs reference (tiled)"

    print("KERNEL_OK")
</pallas_src>

<mosaic_0001>
module attributes {stable_mosaic.version = 11 : i64} {
  func.func @mlp_kernel(%arg0: i32, %arg1: memref<8x128xf32, #tpu.memory_space<vmem>>, %arg2: memref<256x8xf32, #tpu.memory_space<vmem>>, %arg3: memref<1x256xf32, #tpu.memory_space<vmem>>) attributes {dimension_semantics = [#tpu.dimension_semantics<parallel>], iteration_bounds = array<i64: 1>, scalar_prefetch = 0 : i64, scratch_operands = 0 : i64, tpu.core_type = #tpu.core_type<tc>, window_params = [{pipeline_mode = #tpu.pipeline_mode<synchronous>, transform_indices = @transform_0, window_bounds = array<i64: 8, 128>}, {transform_indices = @transform_1, window_bounds = array<i64: 256, 8>}, {transform_indices = @transform_2, window_bounds = array<i64: 1, 256>}]} {
    %c0 = arith.constant 0 : index
    %c0_0 = arith.constant 0 : index
    %0 = vector.load %arg2[%c0, %c0_0] : memref<256x8xf32, #tpu.memory_space<vmem>>, vector<256x8xf32>
    %c0_1 = arith.constant 0 : index
    %c0_2 = arith.constant 0 : index
    %1 = vector.load %arg1[%c0_1, %c0_2] : memref<8x128xf32, #tpu.memory_space<vmem>>, vector<7x8xf32>
    %c0_3 = arith.constant 0 : index
    %c8 = arith.constant 8 : index
    %2 = vector.load %arg1[%c0_3, %c8] : memref<8x128xf32, #tpu.memory_space<vmem>>, vector<7x1xf32>
    %c0_4 = arith.constant 0 : index
    %c9 = arith.constant 9 : index
    %3 = vector.load %arg1[%c0_4, %c9] : memref<8x128xf32, #tpu.memory_space<vmem>>, vector<5x7xf32>
    %c0_5 = arith.constant 0 : index
    %c16 = arith.constant 16 : index
    %4 = vector.load %arg1[%c0_5, %c16] : memref<8x128xf32, #tpu.memory_space<vmem>>, vector<1x5xf32>
    %cst = arith.constant dense<0.000000e+00> : vector<7x256xf32>
    %5 = tpu.matmul %1, %0, %cst {dimension_numbers = #tpu.dot_dimension_numbers<[1], [1], [0], [0], [0, 0, 1, 0], [], []>} : vector<7x8xf32>, vector<256x8xf32>, vector<7x256xf32> -> vector<7x256xf32>
    %6 = vector.broadcast %2 : vector<7x1xf32> to vector<7x256xf32>
    %7 = arith.addf %5, %6 : vector<7x256xf32>
    %cst_6 = arith.constant 0.000000e+00 : f32
    %8 = vector.broadcast %cst_6 : f32 to vector<7x256xf32>
    %9 = arith.maximumf %7, %8 : vector<7x256xf32>
    %cst_7 = arith.constant dense<0.000000e+00> : vector<5x256xf32>
    %10 = tpu.matmul %3, %9, %cst_7 {dimension_numbers = #tpu.dot_dimension_numbers<[1], [0], [0], [1], [0, 0, 1, 1], [], []>} : vector<5x7xf32>, vector<7x256xf32>, vector<5x256xf32> -> vector<5x256xf32>
    %cst_8 = arith.constant 0.000000e+00 : f32
    %11 = vector.broadcast %cst_8 : f32 to vector<5x256xf32>
    %12 = arith.maximumf %10, %11 : vector<5x256xf32>
    %cst_9 = arith.constant dense<0.000000e+00> : vector<1x256xf32>
    %13 = tpu.matmul %4, %12, %cst_9 {dimension_numbers = #tpu.dot_dimension_numbers<[1], [0], [0], [1], [0, 0, 1, 1], [], []>} : vector<1x5xf32>, vector<5x256xf32>, vector<1x256xf32> -> vector<1x256xf32>
    %cst_10 = arith.constant 5.000000e-01 : f32
    %14 = vector.broadcast %cst_10 : f32 to vector<1x256xf32>
    %15 = arith.mulf %14, %13 : vector<1x256xf32>
    %16 = math.tanh %15 : vector<1x256xf32>
    %cst_11 = arith.constant 5.000000e-01 : f32
    %17 = vector.broadcast %cst_11 : f32 to vector<1x256xf32>
    %18 = arith.mulf %17, %16 : vector<1x256xf32>
    %cst_12 = arith.constant 5.000000e-01 : f32
    %19 = vector.broadcast %cst_12 : f32 to vector<1x256xf32>
    %20 = arith.addf %18, %19 : vector<1x256xf32>
    %c0_13 = arith.constant 0 : index
    %c0_14 = arith.constant 0 : index
    %21 = vector.load %arg3[%c0_13, %c0_14] : memref<1x256xf32, #tpu.memory_space<vmem>>, vector<1x256xf32>
    tpu.vector_store %arg3[%c0_13, %c0_14], %20 {strides = array<i32>} : memref<1x256xf32, #tpu.memory_space<vmem>>, vector<1x256xf32>,
    return
  }
  func.func @transform_0(%arg0: i32) -> (i32, i32) {
    %c0_i32 = arith.constant 0 : i32
    %c0_i32_0 = arith.constant 0 : i32
    %c0_i32_1 = arith.constant 0 : i32
    return %c0_i32, %c0_i32_0 : i32, i32
  }
  func.func @transform_1(%arg0: i32) -> (i32, i32) {
    %c0_i32 = arith.constant 0 : i32
    %c0_i32_0 = arith.constant 0 : i32
    return %arg0, %c0_i32 : i32, i32
  }
  func.func @transform_2(%arg0: i32) -> (i32, i32) {
    %c0_i32 = arith.constant 0 : i32
    %c0_i32_0 = arith.constant 0 : i32
    return %c0_i32, %arg0 : i32, i32
  }
}

</mosaic_0001>

<bundles_post_ra>
// kernel: tpu_custom_call.1
= control target key start
LH: loop header
LB: loop body
LE: loop exit
PB: predicated region body
PF: predicated region fallthrough
CT: control target
= control target key end

     0   :  { %vm52_vm0 = vcmask 64512   ;;  %v595_v7 = vmov 8   ;;  %s773_s0 = inlined_call_operand.vmem [shape: f32[8,128], index: 0, kind: input, shape index: {}]   ;;  %s774_s1 = inlined_call_operand.vmem [shape: f32[256,8], index: 1, kind: input, shape index: {}]   ;;  %s775_s2 = inlined_call_operand.hbm [shape: f32[1,256], index: 2, kind: output, shape index: {}]  }
   0x1   :  { %v28_v0 = vld [vmem:[%s774_s1 + $0x80] sm:$0xff]  ;;  %v29_v1 = vld [vmem:[%s774_s1 + $0x88] sm:$0xff]  ;;  %vm627_vm1 = vmpackc.low %vm52_vm0, %vm52_vm0  ;;  %566 = vset.pattern.permute.xlu0 %v595_v7 }
   0x2   :  { %v12_v2 = vld [vmem:[%s774_s1] sm:$0xff]  ;;  %v512_v3 = vpack.c.bf16 %v29_v1, %v28_v0  ;;  %v13_v5 = vld [vmem:[%s774_s1 + $0x8] sm:$0xff]  ;;  %v30_v6 = vld [vmem:[%s774_s1 + $0x90] sm:$0xff] }
   0x3   :  { %v515_v8 = vpack.c.bf16 %v13_v5, %v12_v2  ;;  %v31_v9 = vld [vmem:[%s774_s1 + $0x98] sm:$0xff]  ;;  %v14_v11 = vld [vmem:[%s774_s1 + $0x10] sm:$0xff]  ;;  %v32_v13 = vld [vmem:[%s774_s1 + $0xa0] sm:$0xff] }
   0x4   :  { %514 = vmatprep.subr.msk.bf16.mxu0 %vm627_vm1, %v512_v3  ;;  %v518_v10 = vpack.c.bf16 %v31_v9, %v30_v6  ;;  %v15_v12 = vld [vmem:[%s774_s1 + $0x18] sm:$0xff]  ;;  %v33_v14 = vld [vmem:[%s774_s1 + $0xa8] sm:$0xff]  ;;  %v44_v17 = vld [vmem:[%s773_s0] sm:$0x7f] }
   0x5   :  { %517 = vmatpush3.bf16.xpose.msk.msra.mxu0 %vm627_vm1, %v515_v8  ;;  %v521_v15 = vpack.c.bf16 %v15_v12, %v14_v11  ;;  %v524_v16 = vpack.c.bf16 %v33_v14, %v32_v13 }
   0x6   :  { %520 = vmatprep.subr.msk.bf16.mxu0 %vm627_vm1, %v518_v10 }
   0x7   :  { %7 = vsyncpa [#allocation3], 0  ;;  %510 = vmatprep.mubr.msk.f32.mxu0 %vm52_vm0, %v44_v17  ;;  %v16_v18 = vld [vmem:[%s774_s1 + $0x20] sm:$0xff]  ;;  %v17_v19 = vld [vmem:[%s774_s1 + $0x28] sm:$0xff]  ;;  %49 = vperm.xlu0 %566, %v44_v17   ;;  %s596_s13 = smov 119   ;;  %v597_v52 = vmov 0.0   ;;  %v408_v9 = vlaneseq }
   0x8   :  { %v34_v20 = vld [vmem:[%s774_s1 + $0xb0] sm:$0xff]  ;;  %v35_v21 = vld [vmem:[%s774_s1 + $0xb8] sm:$0xff]  ;;  %v45_v22 = vld [vmem:[%s773_s0] sm:$0x1f]  ;;  %v527_v23 = vpack.c.bf16 %v17_v19, %v16_v18  ;;  %301 = vmatprep.mubr.f32.mxu1 %v597_v52  ;;  %s598_s24 = smov 112   ;;  %vm230_vm2 = vcmask 1046528  }
   0x9   :  { %v530_v24 = vpack.c.bf16 %v35_v21, %v34_v20  ;;  %v18_v25 = vld [vmem:[%s774_s1 + $0x30] sm:$0xff]  ;;  %v19_v26 = vld [vmem:[%s774_s1 + $0x38] sm:$0xff]  ;;  %v36_v27 = vld [vmem:[%s774_s1 + $0xc0] sm:$0xff]  ;;  %vm227_vm3 = vcmask 56320   ;;  %vm316_vm4 = vcmask 1044480   ;;  %vm313_vm5 = vcmask 39936  }
   0xa   :  { %v37_v28 = vld [vmem:[%s774_s1 + $0xc8] sm:$0xff]  ;;  %v533_v29 = vpack.c.bf16 %v19_v26, %v18_v25  ;;  %v20_v31 = vld [vmem:[%s774_s1 + $0x40] sm:$0xff]  ;;  %v38_v33 = vld [vmem:[%s774_s1 + $0xd0] sm:$0xff]  ;;  %v599_v7 = vmov 1966171168   ;;  %v409_v12 = vshrl.u32 %v408_v9, 7 }
   0xb   :  { %225 = vrot.lane.b32.xlu0 %v45_v22, %s596_s13  ;;  %v536_v30 = vpack.c.bf16 %v37_v28, %v36_v27  ;;  %v21_v32 = vld [vmem:[%s774_s1 + $0x48] sm:$0xff]  ;;  %v39_v34 = vld [vmem:[%s774_s1 + $0xd8] sm:$0xff]  ;;  %v22_v37 = vld [vmem:[%s774_s1 + $0x50] sm:$0xff]  ;;  %v406_v8 = vunpack.c.l.s4 %v599_v7  ;;  %vm422_vm6 = vcmp.lt.s32.totalorder %v408_v9, 256 }
   0xc   :  { %v539_v35 = vpack.c.bf16 %v21_v32, %v20_v31  ;;  %v542_v36 = vpack.c.bf16 %v39_v34, %v38_v33  ;;  %v23_v38 = vld [vmem:[%s774_s1 + $0x58] sm:$0xff]  ;;  %v40_v39 = vld [vmem:[%s774_s1 + $0xe0] sm:$0xff]  ;;  %v41_v40 = vld [vmem:[%s774_s1 + $0xe8] sm:$0xff] }
   0xd   :  { %523 = vmatpush3.bf16.xpose.msk.msra.mxu0 %vm627_vm1, %v521_v15  ;;  %v545_v41 = vpack.c.bf16 %v23_v38, %v22_v37  ;;  %v548_v42 = vpack.c.bf16 %v41_v40, %v40_v39  ;;  %v24_v43 = vld [vmem:[%s774_s1 + $0x60] sm:$0xff]  ;;  %v25_v44 = vld [vmem:[%s774_s1 + $0x68] sm:$0xff]  ;;  %v42_v45 = vld [vmem:[%s774_s1 + $0xf0] sm:$0xff]  ;;  %v407_v11 = vunpack.c.0.s8 %v406_v8 }
   0xe   :  { %526 = vmatprep.subr.msk.bf16.mxu0 %vm627_vm1, %v524_v16  ;;  %v43_v46 = vld [vmem:[%s774_s1 + $0xf8] sm:$0xff]  ;;  %v551_v47 = vpack.c.bf16 %v25_v44, %v24_v43  ;;  %v26_v49 = vld [vmem:[%s774_s1 + $0x70] sm:$0xff]  ;;  %v46_v53 = vld [vmem:[%s773_s0] sm:$0x1]  ;;  %s600_s0 = smov [#allocation2]  }
   0xf   :  { %v554_v48 = vpack.c.bf16 %v43_v46, %v42_v45  ;;  %v27_v50 = vld [vmem:[%s774_s1 + $0x78] sm:$0xff]  ;;  %311 = vrot.lane.b32.xlu1 %v46_v53, %s598_s24  ;;  %v410_v18 = vsub.s32 %v407_v11, %v409_v12  ;;  %s431_s1 = sshll.u32 %s600_s0, 4  ;;  %s432_s1 = int_to_ptr.vmem [resolvable:$true] %s431_s1 }
  0x10   :  { %v557_v51 = vpack.c.bf16 %v27_v50, %v26_v49  ;;  %s571_s25 = scalar_lea.vmem %s432_s1, 32  ;;  %p576_p1 = scmp.lt.s32.totalorder %s432_s1, %s432_s1 }
  0x11   :  { %p572_p0 = scmp.ne.s32.totalorder %s432_s1, %s571_s25  ;;  %p577_p2 = scmp.lt.s32.totalorder %s571_s25, %s571_s25 }
  0x13   :  { %p578_p3 = por %p577_p2, %p576_p1 }
  0x15   :  { %529 = vmatpush3.bf16.xpose.msk.msra.mxu0 %vm627_vm1, %v527_v23  ;;  %p579_p4 = pnand %p578_p3, %p572_p0 }
  0x16   :  { %532 = vmatprep.subr.msk.bf16.mxu0 %vm627_vm1, %v530_v24 }
  0x1d   :  { %535 = vmatpush3.bf16.xpose.msk.msra.mxu0 %vm627_vm1, %v533_v29 }
  0x1e   :  { %538 = vmatprep.subr.msk.bf16.mxu0 %vm627_vm1, %v536_v30 }
  0x25   :  { %541 = vmatpush3.bf16.xpose.msk.msra.mxu0 %vm627_vm1, %v539_v35 }
  0x26   :  { %544 = vmatprep.subr.msk.bf16.mxu0 %vm627_vm1, %v542_v36 }
  0x2d   :  { %547 = vmatpush3.bf16.xpose.msk.msra.mxu0 %vm627_vm1, %v545_v41 }
  0x2e   :  { %550 = vmatprep.subr.msk.bf16.mxu0 %vm627_vm1, %v548_v42 }
  0x35   :  { %553 = vmatpush3.bf16.xpose.msk.msra.mxu0 %vm627_vm1, %v551_v47 }
  0x36   :  { %556 = vmatprep.subr.msk.bf16.mxu0 %vm627_vm1, %v554_v48 }
  0x3d   :  { %559 = vmatpush3.bf16.xpose.msk.msra.mxu0 %vm627_vm1, %v557_v51 }
  0x44   :  { %511 = vmatmul.mubr.msk.f32.vlgmr.msra.gmra.mrb[0].mxu0 %vm52_vm0, %v44_v17 }
  0x81   :  { %v312_v2 = vpop.permute.xlu1 %311 }
  0x86   :  { %v50_v54 = vpop.permute.xlu0 %49 }
  0x8a   :  { %v226_v61 = vpop.permute.xlu0 %225 }
 0x117   :  { %v217_v55 = vpop.f32.mrb[0].mxu0 }
 0x118   :  { %v218_v56 = vadd.f32 %v217_v55, %v50_v54  ;;  %v219_v57 = vpop.f32.mrb[1].mxu0 }
 0x119   :  { %v220_v58 = vadd.f32 %v219_v57, %v50_v54 }
 0x11a   :  { %v222_v60 = vmax.f32 %v218_v56, 0.0 }
 0x11b   :  { %v223_v59 = vmax.f32 %v220_v58, 0.0 }
 0x11d   :  { %472 = vmatprep.subr.msk.mxu1 %vm230_vm2, %v223_v59 }
 0x11e   :  { %473 = vmatpush1.msk.msra.mxu1 %vm230_vm2, %v222_v60 }
 0x11f   :  { %474 = vmatmul.mubr.msk.f32.vlgmr.msra.gmra.mrb[0].mxu1 %vm227_vm3, %v226_v61 }
 0x120   :  { %387 = vmatprep.mubr.f32.mxu1 %v597_v52 }
 0x1f2   :  { %v303_v62 = vpop.f32.mrb[0].mxu1 }
 0x1f3   :  { %v305_v63 = vpop.f32.mrb[1].mxu1  ;;  %v308_v1 = vmax.f32 %v303_v62, 0.0 }
 0x1f4   :  { %v309_v0 = vmax.f32 %v305_v63, 0.0 }
 0x1f6   :  { %475 = vmatprep.subr.msk.mxu1 %vm316_vm4, %v309_v0 }
 0x1f7   :  { %476 = vmatpush1.msk.msra.mxu1 %vm316_vm4, %v308_v1 }
 0x1f8   :  { %477 = vmatmul.mubr.msk.f32.vlgmr.msra.gmra.mrb[2].mxu1 %vm313_vm5, %v312_v2 }
 0x2cb   :  { %v389_v3 = vpop.f32.mrb[2].mxu1 }
 0x2cc   :  { %v394_v4 = vmul.f32 0.5, %v389_v3  ;;  %v391_v5 = vpop.f32.mrb[3].mxu1 }
 0x2cd   :  { %v395_v6 = vmul.f32 0.5, %v391_v5 }
 0x2ce   :  { %567 = vtanh.f32 %v394_v4 }
 0x2cf   :  { %569 = vtanh.f32 %v395_v6 }
 0x2d8   :  { %v568_v10 = vpop.eup %567 }
 0x2d9   :  { %v570_v13 = vpop.eup %569  ;;  %v398_v14 = vmul.f32 0.5, %v568_v10 }
 0x2da   :  { %v399_v15 = vmul.f32 0.5, %v570_v13 }
 0x2db   :  { %v400_v16 = vadd.f32 0.5, %v398_v14 }
 0x2dc   :  { %v401_v17 = vadd.f32 0.5, %v399_v15 }
 0x2de   :  { %v404_v19 = vcombine.low %v400_v16, %v401_v17 }
 0x2e0   :  { %v411_v20 = vrot.slane %v404_v19, %v410_v18 }
 0x2e2   :  { %v418_v21 = vrot.slane %v411_v20, %v410_v18 }
 0x2e4   :  { %424 = vst.msk [vmem:[#allocation2] sm:$0x3] %vm422_vm6, %v418_v21 }
 0x2e5   :  { %582 = shalt.err (!%p579_p4)
}
 0x2e6   :  { %s583_s28 = scalar_lea.hbm %s775_s2, 32 }
 0x2e7   :  { %p584_p5 = scmp.ne.s32.totalorder %s775_s2, %s583_s28  ;;  %p587_p6 = scmp.lt.u32.totalorder %s583_s28, %s775_s2 }
 0x2e9   :  { %p589_p7 = pnand %p587_p6, %p584_p5 }
 0x2eb   :  { %592 = shalt.err (!%p589_p7)
}
 0x2ec   :  { %434 = dma.vmem_to_hbm [thread:$0]  %s432_s1, 32, %s775_s2, [#allocation3]  }
 0x2ed   :  { %593 = dma.done.wait [#allocation3], 32  }
 0x2ee   :  { %594 = vsyncadd [#allocation3], 4294967264 }
 0x2ef   :  { %438 = vsyncpa [#allocation3], 1 }

</bundles_post_ra>
